<compile_context>
chip_gen: v6e
topology: v6e:2x2x1
jax: 0.10.0
libtpu: 0.0.40
codegen_flags: <defaults>
</compile_context>

<pallas_src>
import functools

import jax
import jax.numpy as jnp
from jax.experimental import pallas as pl
from jax.experimental.pallas import tpu as pltpu


def _round_up(x, m):
    return (x + m - 1) // m * m


# ---------------- Pallas kernel ----------------

def _layernorm_torch(x, gamma, beta, n_true, eps=1e-6):
    """Torch-style LayerNorm over the first `n_true` columns of x.

    Requires columns >= n_true of `x` to be exactly zero (guaranteed by the
    zero-padded weight columns and biases), so sum(x) and sum(x*x) need no
    masking.  Unbiased std (n-1); eps added to std (not var) - exactly like the
    PyTorch module.  The two lane reductions are independent (XLU pipelining).
    """
    sum_x = jnp.sum(x, axis=-1, keepdims=True)
    sum_xx = jnp.sum(x * x, axis=-1, keepdims=True)
    mean = sum_x * (1.0 / n_true)
    var = (sum_xx - n_true * mean * mean) * (1.0 / (n_true - 1))
    var = jnp.maximum(var, 0.0)                       # guard fp32 cancellation
    inv = pl.reciprocal(jnp.sqrt(var) + eps, approx=True)   # EUP slot, VPU free
    return gamma * (x - mean) * inv + beta


def _shared_state_embedding_kernel(
    x_ref,    # [bt, state_dim]               fp32
    w1_ref,   # [state_dim, l1p]              compute dtype (bf16 default)
    w2_ref,   # [l1p, l2p]                    compute dtype (bf16 default)
    pk_ref,   # [3, l1p + l2p]                fp32; rows = (bias, gamma, beta),
              #                               lanes [0,l1p)=layer1, [l1p,..)=layer2
    o_ref,    # [bt, l2p]
    *, l1, l2, l1p,
):
    cdt = w1_ref.dtype
    pk = pk_ref[...]
    b1, g1, be1 = pk[0:1, :l1p], pk[1:2, :l1p], pk[2:3, :l1p]
    b2, g2, be2 = pk[0:1, l1p:], pk[1:2, l1p:], pk[2:3, l1p:]

    # Layer 1: linear -> layernorm -> tanh (MXU matmul, fp32 accumulate).
    h = jnp.dot(x_ref[...].astype(cdt), w1_ref[...],
                preferred_element_type=jnp.float32)
    h = h + b1
    h = _layernorm_torch(h, g1, be1, n_true=l1)
    # tanh on the value already cast for the layer-2 matmul -> bf16 EUP on v6e/v7x.
    h = jnp.tanh(h.astype(cdt))

    # Layer 2: linear -> layernorm -> tanh.
    h2 = jnp.dot(h, w2_ref[...], preferred_element_type=jnp.float32)
    h2 = h2 + b2
    h2 = _layernorm_torch(h2, g2, be2, n_true=l2)
    o_ref[...] = jnp.tanh(h2).astype(o_ref.dtype)


# ---------------- parameter packing (done once, outside the kernel) ----------------

def pack_params(p, *, compute_dtype=jnp.bfloat16):
    """Pad feature dims to 128-lane multiples, pre-cast weights to the MXU
    compute dtype, and pack bias/gamma/beta of both layers into one fp32 array.

    pk layout: shape (3, l1p + l2p); row 0 = [b1 | b2], row 1 = [gamma1 | gamma2],
    row 2 = [beta1 | beta2].  All padding lanes are zero, so padded hidden
    columns stay exactly zero through both layers (required by the unmasked
    LayerNorm reductions in the kernel).
    """
    state_dim, l1 = p["w1"].shape
    _, l2 = p["w2"].shape
    l1p = _round_up(l1, 128)
    l2p = _round_up(l2, 128)

    w1 = jnp.pad(p["w1"], ((0, 0), (0, l1p - l1))).astype(compute_dtype)
    w2 = jnp.pad(p["w2"], ((0, l1p - l1), (0, l2p - l2))).astype(compute_dtype)

    def row(a, b):
        return jnp.concatenate(
            [jnp.pad(a, ((0, 0), (0, l1p - l1))),
             jnp.pad(b, ((0, 0), (0, l2p - l2)))], axis=1)

    pk = jnp.concatenate(
        [row(p["b1"], p["b2"]), row(p["g1"], p["g2"]), row(p["be1"], p["be2"])],
        axis=0).astype(jnp.float32)

    return dict(w1=w1, w2=w2, pk=pk, state_dim=state_dim,
                l1=l1, l2=l2, l1p=l1p, l2p=l2p)


# ---------------- wrapper ----------------

def _choose_batch_tiling(B, batch_tile):
    """Divisor-aware batch tile: minimizes zero-padding waste and gives the
    'parallel' grid axis >= 2 steps for large batches (v7x has 2 TensorCores)."""
    Bp8 = _round_up(max(B, 1), 8)
    n_tiles = max(1, -(-Bp8 // batch_tile))
    if n_tiles == 1 and Bp8 >= 512:
        n_tiles = 2
    bt = _round_up(-(-Bp8 // n_tiles), 8)
    return bt, bt * n_tiles


def shared_state_embedding_forward(state, packed, *, batch_tile=1024,
                                   out_dtype=jnp.float32):
    """state: [B, state_dim] fp32.  packed: output of pack_params()."""
    B, state_dim = state.shape
    l1, l2 = packed["l1"], packed["l2"]
    l1p, l2p = packed["l1p"], packed["l2p"]

    bt, Bp = _choose_batch_tiling(B, batch_tile)
    if Bp != B:
        state = jnp.pad(state, ((0, Bp - B), (0, 0)))
    grid = (Bp // bt,)

    kernel = functools.partial(_shared_state_embedding_kernel,
                               l1=l1, l2=l2, l1p=l1p)

    out = pl.pallas_call(
        kernel,
        out_shape=jax.ShapeDtypeStruct((Bp, l2p), out_dtype),
        grid=grid,
        in_specs=[
            pl.BlockSpec((bt, state_dim), lambda i: (i, 0)),    # x: tiled over batch
            pl.BlockSpec((state_dim, l1p), lambda i: (0, 0)),   # weights resident
            pl.BlockSpec((l1p, l2p), lambda i: (0, 0)),
            pl.BlockSpec((3, l1p + l2p), lambda i: (0, 0)),     # packed b/gamma/beta
        ],
        out_specs=pl.BlockSpec((bt, l2p), lambda i: (i, 0)),
        compiler_params=pltpu.CompilerParams(
            dimension_semantics=("parallel",),
            # Only needed for very large tiles (v5e scoped-VMEM default is 16 MiB).
            vmem_limit_bytes=(32 << 20) if bt >= 1024 else None),
    )(state, packed["w1"], packed["w2"], packed["pk"])

    return out[:B, :l2]


# ---------------- parameter init (deterministic, synthetic) ----------------

def init_params(key, state_dim, l1, l2):
    k1, k2, k3, k4 = jax.random.split(key, 4)
    w1 = jax.random.normal(k1, (state_dim, l1), jnp.float32) / jnp.sqrt(state_dim)
    b1 = jax.random.normal(k2, (1, l1), jnp.float32) * 0.01
    w2 = jax.random.normal(k3, (l1, l2), jnp.float32) / jnp.sqrt(l1)
    b2 = jax.random.normal(k4, (1, l2), jnp.float32) * 0.01
    return dict(
        w1=w1, b1=b1,
        g1=jnp.ones((1, l1), jnp.float32), be1=jnp.zeros((1, l1), jnp.float32),
        w2=w2, b2=b2,
        g2=jnp.ones((1, l2), jnp.float32), be2=jnp.zeros((1, l2), jnp.float32),
    )


# ---------------- pure-JAX reference for sanity check ----------------

def _layernorm_ref(x, gamma, beta, eps=1e-6):
    n = x.shape[-1]
    mean = jnp.mean(x, axis=-1, keepdims=True)
    c = x - mean
    var = jnp.sum(c * c, axis=-1, keepdims=True) / (n - 1)
    std = jnp.sqrt(var)
    return gamma * c / (std + eps) + beta


def reference_forward(state, p):
    h = state @ p["w1"] + p["b1"]
    h = _layernorm_ref(h, p["g1"], p["be1"])
    h = jnp.tanh(h)
    h2 = h @ p["w2"] + p["b2"]
    h2 = _layernorm_ref(h2, p["g2"], p["be2"])
    return jnp.tanh(h2)


if __name__ == "__main__":
    # Shapes consistent with the module: args.state_dim=32, l1=400, args.ls=64,
    # args.use_ln=True.  Small batch (8) matches the production RL path.
    B, STATE_DIM, L1, L2 = 8, 32, 400, 64

    key = jax.random.PRNGKey(0)
    pkey, xkey = jax.random.split(key)
    params = init_params(pkey, STATE_DIM, L1, L2)
    state = jax.random.normal(xkey, (B, STATE_DIM), jnp.float32)

    ref = jax.block_until_ready(reference_forward(state, params))

    # Default path: bf16 MXU operands + bf16 layer-1 tanh (fp32 accumulation,
    # fp32 LayerNorm statistics).  Tolerance accounts for bf16 operand rounding
    # and the EUP approximate reciprocal.
    packed_bf16 = pack_params(params, compute_dtype=jnp.bfloat16)
    out_bf16 = jax.block_until_ready(
        shared_state_embedding_forward(state, packed_bf16))
    assert out_bf16.shape == (B, L2)
    assert jnp.max(jnp.abs(out_bf16 - ref)) < 5e-2, "bf16 path mismatch vs reference"

    # Tight-numerics path: fp32 MXU operands (flag for users needing ~1e-3);
    # remaining error is dominated by pl.reciprocal(approx=True) in LayerNorm.
    packed_f32 = pack_params(params, compute_dtype=jnp.float32)
    out_f32 = jax.block_until_ready(
        shared_state_embedding_forward(state, packed_f32))
    assert jnp.max(jnp.abs(out_f32 - ref)) < 1e-2, "fp32 path mismatch vs reference"

    print("KERNEL_OK")
</pallas_src>

<mosaic_0001>
module attributes {stable_mosaic.version = 11 : i64} {
  func.func @_shared_state_embedding_kernel(%arg0: i32, %arg1: memref<8x32xf32, #tpu.memory_space<vmem>>, %arg2: memref<32x512xbf16, #tpu.memory_space<vmem>>, %arg3: memref<512x128xbf16, #tpu.memory_space<vmem>>, %arg4: memref<3x640xf32, #tpu.memory_space<vmem>>, %arg5: memref<8x128xf32, #tpu.memory_space<vmem>>) attributes {dimension_semantics = [#tpu.dimension_semantics<parallel>], iteration_bounds = array<i64: 1>, scalar_prefetch = 0 : i64, scratch_operands = 0 : i64, tpu.core_type = #tpu.core_type<tc>, window_params = [{transform_indices = @transform_0, window_bounds = array<i64: 8, 32>}, {pipeline_mode = #tpu.pipeline_mode<synchronous>, transform_indices = @transform_1, window_bounds = array<i64: 32, 512>}, {pipeline_mode = #tpu.pipeline_mode<synchronous>, transform_indices = @transform_2, window_bounds = array<i64: 512, 128>}, {pipeline_mode = #tpu.pipeline_mode<synchronous>, transform_indices = @transform_3, window_bounds = array<i64: 3, 640>}, {transform_indices = @transform_4, window_bounds = array<i64: 8, 128>}]} {
    %c0 = arith.constant 0 : index
    %c0_0 = arith.constant 0 : index
    %0 = vector.load %arg4[%c0, %c0_0] : memref<3x640xf32, #tpu.memory_space<vmem>>, vector<3x640xf32>
    %1 = vector.extract_strided_slice %0 {offsets = [0, 0], sizes = [1, 512], strides = [1, 1]} : vector<3x640xf32> to vector<1x512xf32>
    %2 = vector.extract_strided_slice %0 {offsets = [1, 0], sizes = [1, 512], strides = [1, 1]} : vector<3x640xf32> to vector<1x512xf32>
    %3 = vector.extract_strided_slice %0 {offsets = [2, 0], sizes = [1, 512], strides = [1, 1]} : vector<3x640xf32> to vector<1x512xf32>
    %4 = vector.extract_strided_slice %0 {offsets = [0, 512], sizes = [1, 128], strides = [1, 1]} : vector<3x640xf32> to vector<1x128xf32>
    %5 = vector.extract_strided_slice %0 {offsets = [1, 512], sizes = [1, 128], strides = [1, 1]} : vector<3x640xf32> to vector<1x128xf32>
    %6 = vector.extract_strided_slice %0 {offsets = [2, 512], sizes = [1, 128], strides = [1, 1]} : vector<3x640xf32> to vector<1x128xf32>
    %c0_1 = arith.constant 0 : index
    %c0_2 = arith.constant 0 : index
    %7 = vector.load %arg1[%c0_1, %c0_2] : memref<8x32xf32, #tpu.memory_space<vmem>>, vector<8x32xf32>
    %8 = arith.truncf %7 : vector<8x32xf32> to vector<8x32xbf16>
    %c0_3 = arith.constant 0 : index
    %c0_4 = arith.constant 0 : index
    %9 = vector.load %arg2[%c0_3, %c0_4] : memref<32x512xbf16, #tpu.memory_space<vmem>>, vector<32x512xbf16>
    %cst = arith.constant dense<0.000000e+00> : vector<8x512xf32>
    %10 = tpu.matmul %8, %9, %cst {dimension_numbers = #tpu.dot_dimension_numbers<[1], [0], [0], [1], [0, 0, 1, 1], [], []>} : vector<8x32xbf16>, vector<32x512xbf16>, vector<8x512xf32> -> vector<8x512xf32>
    %11 = vector.broadcast %1 : vector<1x512xf32> to vector<8x512xf32>
    %12 = arith.addf %10, %11 : vector<8x512xf32>
    %cst_5 = arith.constant dense<0.000000e+00> : vector<8xf32>
    %13 = vector.multi_reduction <add>, %12, %cst_5 [1] : vector<8x512xf32> to vector<8xf32>
    %14 = vector.shape_cast %13 : vector<8xf32> to vector<8x1xf32>
    %15 = arith.mulf %12, %12 : vector<8x512xf32>
    %cst_6 = arith.constant dense<0.000000e+00> : vector<8xf32>
    %16 = vector.multi_reduction <add>, %15, %cst_6 [1] : vector<8x512xf32> to vector<8xf32>
    %17 = vector.shape_cast %16 : vector<8xf32> to vector<8x1xf32>
    %cst_7 = arith.constant 2.500000e-03 : f32
    %18 = vector.broadcast %cst_7 : f32 to vector<8x1xf32>
    %19 = arith.mulf %14, %18 : vector<8x1xf32>
    %cst_8 = arith.constant 4.000000e+02 : f32
    %20 = vector.broadcast %cst_8 : f32 to vector<8x1xf32>
    %21 = arith.mulf %20, %19 : vector<8x1xf32>
    %22 = arith.mulf %21, %19 : vector<8x1xf32>
    %23 = arith.subf %17, %22 : vector<8x1xf32>
    %cst_9 = arith.constant 0.00250626565 : f32
    %24 = vector.broadcast %cst_9 : f32 to vector<8x1xf32>
    %25 = arith.mulf %23, %24 : vector<8x1xf32>
    %cst_10 = arith.constant 0.000000e+00 : f32
    %26 = vector.broadcast %cst_10 : f32 to vector<8x1xf32>
    %27 = arith.maximumf %25, %26 : vector<8x1xf32>
    %28 = math.sqrt %27 : vector<8x1xf32>
    %cst_11 = arith.constant 9.99999997E-7 : f32
    %29 = vector.broadcast %cst_11 : f32 to vector<8x1xf32>
    %30 = arith.addf %28, %29 : vector<8x1xf32>
    %31 = tpu.reciprocal %30 {approx = true} : vector<8x1xf32> -> vector<8x1xf32>
    %32 = vector.broadcast %19 : vector<8x1xf32> to vector<8x512xf32>
    %33 = arith.subf %12, %32 : vector<8x512xf32>
    %34 = vector.broadcast %2 : vector<1x512xf32> to vector<8x512xf32>
    %35 = arith.mulf %34, %33 : vector<8x512xf32>
    %36 = vector.broadcast %31 : vector<8x1xf32> to vector<8x512xf32>
    %37 = arith.mulf %35, %36 : vector<8x512xf32>
    %38 = vector.broadcast %3 : vector<1x512xf32> to vector<8x512xf32>
    %39 = arith.addf %37, %38 : vector<8x512xf32>
    %40 = arith.truncf %39 : vector<8x512xf32> to vector<8x512xbf16>
    %41 = math.tanh %40 : vector<8x512xbf16>
    %c0_12 = arith.constant 0 : index
    %c0_13 = arith.constant 0 : index
    %42 = vector.load %arg3[%c0_12, %c0_13] : memref<512x128xbf16, #tpu.memory_space<vmem>>, vector<512x128xbf16>
    %cst_14 = arith.constant dense<0.000000e+00> : vector<8x128xf32>
    %43 = tpu.matmul %41, %42, %cst_14 {dimension_numbers = #tpu.dot_dimension_numbers<[1], [0], [0], [1], [0, 0, 1, 1], [], []>} : vector<8x512xbf16>, vector<512x128xbf16>, vector<8x128xf32> -> vector<8x128xf32>
    %44 = vector.broadcast %4 : vector<1x128xf32> to vector<8x128xf32>
    %45 = arith.addf %43, %44 : vector<8x128xf32>
    %cst_15 = arith.constant dense<0.000000e+00> : vector<8xf32>
    %46 = vector.multi_reduction <add>, %45, %cst_15 [1] : vector<8x128xf32> to vector<8xf32>
    %47 = vector.shape_cast %46 : vector<8xf32> to vector<8x1xf32>
    %48 = arith.mulf %45, %45 : vector<8x128xf32>
    %cst_16 = arith.constant dense<0.000000e+00> : vector<8xf32>
    %49 = vector.multi_reduction <add>, %48, %cst_16 [1] : vector<8x128xf32> to vector<8xf32>
    %50 = vector.shape_cast %49 : vector<8xf32> to vector<8x1xf32>
    %cst_17 = arith.constant 1.562500e-02 : f32
    %51 = vector.broadcast %cst_17 : f32 to vector<8x1xf32>
    %52 = arith.mulf %47, %51 : vector<8x1xf32>
    %cst_18 = arith.constant 6.400000e+01 : f32
    %53 = vector.broadcast %cst_18 : f32 to vector<8x1xf32>
    %54 = arith.mulf %53, %52 : vector<8x1xf32>
    %55 = arith.mulf %54, %52 : vector<8x1xf32>
    %56 = arith.subf %50, %55 : vector<8x1xf32>
    %cst_19 = arith.constant 0.0158730168 : f32
    %57 = vector.broadcast %cst_19 : f32 to vector<8x1xf32>
    %58 = arith.mulf %56, %57 : vector<8x1xf32>
    %cst_20 = arith.constant 0.000000e+00 : f32
    %59 = vector.broadcast %cst_20 : f32 to vector<8x1xf32>
    %60 = arith.maximumf %58, %59 : vector<8x1xf32>
    %61 = math.sqrt %60 : vector<8x1xf32>
    %cst_21 = arith.constant 9.99999997E-7 : f32
    %62 = vector.broadcast %cst_21 : f32 to vector<8x1xf32>
    %63 = arith.addf %61, %62 : vector<8x1xf32>
    %64 = tpu.reciprocal %63 {approx = true} : vector<8x1xf32> -> vector<8x1xf32>
    %65 = vector.broadcast %52 : vector<8x1xf32> to vector<8x128xf32>
    %66 = arith.subf %45, %65 : vector<8x128xf32>
    %67 = vector.broadcast %5 : vector<1x128xf32> to vector<8x128xf32>
    %68 = arith.mulf %67, %66 : vector<8x128xf32>
    %69 = vector.broadcast %64 : vector<8x1xf32> to vector<8x128xf32>
    %70 = arith.mulf %68, %69 : vector<8x128xf32>
    %71 = vector.broadcast %6 : vector<1x128xf32> to vector<8x128xf32>
    %72 = arith.addf %70, %71 : vector<8x128xf32>
    %73 = math.tanh %72 : vector<8x128xf32>
    %c0_22 = arith.constant 0 : index
    %c0_23 = arith.constant 0 : index
    %74 = vector.load %arg5[%c0_22, %c0_23] : memref<8x128xf32, #tpu.memory_space<vmem>>, vector<8x128xf32>
    tpu.vector_store %arg5[%c0_22, %c0_23], %73 {strides = array<i32>} : memref<8x128xf32, #tpu.memory_space<vmem>>, vector<8x128xf32>,
    return
  }
  func.func @transform_0(%arg0: i32) -> (i32, i32) {
    %c0_i32 = arith.constant 0 : i32
    %c0_i32_0 = arith.constant 0 : i32
    return %arg0, %c0_i32 : i32, i32
  }
  func.func @transform_1(%arg0: i32) -> (i32, i32) {
    %c0_i32 = arith.constant 0 : i32
    %c0_i32_0 = arith.constant 0 : i32
    %c0_i32_1 = arith.constant 0 : i32
    return %c0_i32, %c0_i32_0 : i32, i32
  }
  func.func @transform_2(%arg0: i32) -> (i32, i32) {
    %c0_i32 = arith.constant 0 : i32
    %c0_i32_0 = arith.constant 0 : i32
    %c0_i32_1 = arith.constant 0 : i32
    return %c0_i32, %c0_i32_0 : i32, i32
  }
  func.func @transform_3(%arg0: i32) -> (i32, i32) {
    %c0_i32 = arith.constant 0 : i32
    %c0_i32_0 = arith.constant 0 : i32
    %c0_i32_1 = arith.constant 0 : i32
    return %c0_i32, %c0_i32_0 : i32, i32
  }
  func.func @transform_4(%arg0: i32) -> (i32, i32) {
    %c0_i32 = arith.constant 0 : i32
    %c0_i32_0 = arith.constant 0 : i32
    return %arg0, %c0_i32 : i32, i32
  }
}

</mosaic_0001>

<bundles_post_ra>
// kernel: tpu_custom_call.1
= control target key start
LH: loop header
LB: loop body
LE: loop exit
PB: predicated region body
PF: predicated region fallthrough
CT: control target
= control target key end

     0   :  { %9 = vsyncpa [#allocation3], 0  ;;  %s1154_s0 = inlined_call_operand.hbm [shape: f32[8,32], index: 0, kind: input, shape index: {}]   ;;  %s1155_s1 = inlined_call_operand.hbm [shape: bf16[32,512], index: 1, kind: input, shape index: {}]   ;;  %s1156_s2 = inlined_call_operand.hbm [shape: bf16[512,128], index: 2, kind: input, shape index: {}]   ;;  %s1157_s3 = inlined_call_operand.hbm [shape: f32[3,640], index: 3, kind: input, shape index: {}]   ;;  %s1158_s4 = inlined_call_operand.hbm [shape: f32[8,128], index: 4, kind: output, shape index: {}]  }
   0x1   :  { %10 = vsyncpa [#allocation6], 0 }
   0x2   :  { %11 = vsyncpa [#allocation9], 0 }
   0x3   :  { %12 = vsyncpa [#allocation4], 0  ;;  %s1029_s15 = smov [#allocation5]  }
   0x4   :  { %s28_s16 = sshll.u32 %s1029_s15, 4  ;;  %s29_s16 = int_to_ptr.vmem [resolvable:$true] %s28_s16 }
   0x5   :  { %s929_s17 = scalar_lea.vmem %s29_s16, 1024  ;;  %p934_p1 = scmp.lt.s32.totalorder %s29_s16, %s29_s16 }
   0x6   :  { %p930_p0 = scmp.ne.s32.totalorder %s29_s16, %s929_s17  ;;  %p935_p2 = scmp.lt.s32.totalorder %s929_s17, %s929_s17 }
   0x8   :  { %p936_p3 = por %p935_p2, %p934_p1 }
   0xa   :  { %p937_p4 = pnand %p936_p3, %p930_p0 }
   0xc   :  { %940 = shalt.err (!%p937_p4)
}
   0xd   :  { %s1030_s18 = smov 256   ;;  %s1031_s19 = smov 16  }
   0xe   :  { %34 = dma.hbm_to_vmem [thread:$0]  %s1155_s1, 1024, %s29_s16, [#allocation6], %s1030_s18, %s1030_s18, %s1031_s19  }
   0xf   :  { %s1032_s22 = smov [#allocation2]   ;;  %s1033_s24 = smov [#allocation7]  }
  0x10   :  { %s19_s23 = sshll.u32 %s1032_s22, 4  ;;  %s40_s25 = sshll.u32 %s1033_s24, 4  ;;  %s20_s23 = int_to_ptr.vmem [resolvable:$true] %s19_s23  ;;  %s41_s25 = int_to_ptr.vmem [resolvable:$true] %s40_s25 }
  0x11   :  { %s949_s26 = scalar_lea.vmem %s20_s23, 128  ;;  %p954_p6 = scmp.lt.s32.totalorder %s20_s23, %s20_s23 }
  0x12   :  { %p950_p5 = scmp.ne.s32.totalorder %s20_s23, %s949_s26  ;;  %p955_p7 = scmp.lt.s32.totalorder %s949_s26, %s949_s26 }
  0x14   :  { %p956_p8 = por %p955_p7, %p954_p6 }
  0x16   :  { %p957_p9 = pnand %p956_p8, %p950_p5 }
  0x18   :  { %960 = shalt.err (!%p957_p9)
}
  0x19   :  { %22 = dma.hbm_to_vmem [thread:$0]  %s1154_s0, 128, %s20_s23, [#allocation3]  }
  0x1a   :  { %s969_s29 = scalar_lea.vmem %s41_s25, 4096  ;;  %p974_p11 = scmp.lt.s32.totalorder %s41_s25, %s41_s25 }
  0x1b   :  { %p970_p10 = scmp.ne.s32.totalorder %s41_s25, %s969_s29  ;;  %p975_p12 = scmp.lt.s32.totalorder %s969_s29, %s969_s29 }
  0x1d   :  { %p976_p13 = por %p975_p12, %p974_p11 }
  0x1f   :  { %p977_p0 = pnand %p976_p13, %p970_p10 }
  0x21   :  { %980 = shalt.err (!%p977_p0)
}
  0x22   :  { %s1034_s1 = smov 64   ;;  %s1035_s30 = smov 4  }
  0x23   :  { %46 = dma.hbm_to_vmem [thread:$0]  %s1156_s2, 4096, %s41_s25, [#allocation6], %s1034_s1, %s1034_s1, %s1035_s30  }
  0x24   :  { %s1036_s7 = smov [#allocation8]  }
  0x25   :  { %s53_s8 = sshll.u32 %s1036_s7, 4  ;;  %s54_s8 = int_to_ptr.vmem [resolvable:$true] %s53_s8 }
  0x26   :  { %s989_s9 = scalar_lea.vmem %s54_s8, 320  ;;  %p994_p2 = scmp.lt.s32.totalorder %s54_s8, %s54_s8 }
  0x27   :  { %p990_p1 = scmp.ne.s32.totalorder %s54_s8, %s989_s9  ;;  %p995_p3 = scmp.lt.s32.totalorder %s989_s9, %s989_s9 }
  0x29   :  { %p996_p4 = por %p995_p3, %p994_p2 }
  0x2b   :  { %p997_p5 = pnand %p996_p4, %p990_p1 }
  0x2d   :  { %1000 = shalt.err (!%p997_p5)
}
  0x2e   :  { %56 = dma.hbm_to_vmem [thread:$0]  %s1157_s3, 320, %s54_s8, [#allocation9]  }
  0x2f   :  { %1021 = dma.done.wait [#allocation3], 128  }
  0x30   :  { %1022 = vsyncadd [#allocation3], 4294967168 }
  0x31   :  { %1023 = dma.done.wait [#allocation6], 5120  }
  0x32   :  { %1024 = vsyncadd [#allocation6], 4294962176 }
  0x33   :  { %1025 = dma.done.wait [#allocation9], 320  }
  0x34   :  { %1026 = vsyncadd [#allocation9], 4294966976  ;;  %v1037_v0 = vmov 0   ;;  %v859_v1 = vld [vmem:[#allocation5 + $0x24] ss:$16 sps:$4 sm:$0xff]   ;;  %v73_v9 = vld [vmem:[#allocation2] sm:$0xff]  ;;  %v85_v11 = vlaneseq }
  0x35   :  { %197 = vmatprep.mubr.bf16.mxu0 %v1037_v0  ;;  %238 = vmatprep.mubr.bf16.mxu1 %v1037_v0  ;;  %v861_v2 = vld [vmem:[#allocation5 + $0x2c] ss:$16 sps:$4 sm:$0xff]   ;;  %v863_v3 = vld [vmem:[#allocation5 + $0x20] ss:$16 sps:$4 sm:$0xff]   ;;  %v864_v4 = vld [vmem:[#allocation5 + $0x28] ss:$16 sps:$4 sm:$0xff]   ;;  %v74_v10 = vpack.c.bf16 %v73_v9, %v73_v9 }
  0x36   :  { %177 = vmatprep.subr.bf16.mxu0 %v859_v1  ;;  %218 = vmatprep.subr.bf16.mxu1 %v861_v2  ;;  %v865_v5 = vld [vmem:[#allocation5 + $0x4] ss:$16 sps:$4 sm:$0xff]   ;;  %v867_v6 = vld [vmem:[#allocation5 + $0xc] ss:$16 sps:$4 sm:$0xff]   ;;  %v869_v7 = vld [vmem:[#allocation5] ss:$16 sps:$4 sm:$0xff]  }
  0x37   :  { %178 = vmatpush1.bf16.msra.mxu0 %v863_v3  ;;  %219 = vmatpush1.bf16.msra.mxu1 %v864_v4  ;;  %v870_v8 = vld [vmem:[#allocation5 + $0x8] ss:$16 sps:$4 sm:$0xff]   ;;  %vm161_vm0 = vcmask 261120   ;;  %v1076_v12 = vshrl.u32 %v85_v11, 7  ;;  %v1081_v14 = vld [vmem:[#allocation8] sm:$0x77] }
  0x38   :  { %179 = vmatprep.subr.bf16.mxu0 %v865_v5  ;;  %220 = vmatprep.subr.bf16.mxu1 %v867_v6  ;;  %v1083_v15 = vld [vmem:[#allocation8 + $0x8] sm:$0x77]  ;;  %v871_v47 = vld [vmem:[#allocation7 + $0x78] sm:$0xff]   ;;  %v875_v51 = vld [vmem:[#allocation7 + $0x70] sm:$0xff]   ;;  %s1038_s2 = smov [#allocation10]  }
  0x39   :  { %v1079_v13 = vsub.s32 0, %v1076_v12  ;;  %v91_v16 = vsub.s32 4, %v1076_v12  ;;  %v872_v48 = vld [vmem:[#allocation7 + $0xf8] sm:$0xff]   ;;  %v876_v52 = vld [vmem:[#allocation7 + $0xf0] sm:$0xff]   ;;  %v879_v55 = vld [vmem:[#allocation7 + $0x68] sm:$0xff]   ;;  %s752_s3 = sshll.u32 %s1038_s2, 4  ;;  %s753_s3 = int_to_ptr.vmem [resolvable:$true] %s752_s3 }
  0x3a   :  { %v873_v49 = vld [vmem:[#allocation7 + $0x38] sm:$0xff]   ;;  %v877_v53 = vld [vmem:[#allocation7 + $0x30] sm:$0xff]   ;;  %v880_v56 = vld [vmem:[#allocation7 + $0xe8] sm:$0xff]   ;;  %s1001_s11 = scalar_lea.vmem %s753_s3, 128  ;;  %p1006_p7 = scmp.lt.s32.totalorder %s753_s3, %s753_s3 }
  0x3b   :  { %180 = vmatpush1.bf16.msra.mxu0 %v869_v7  ;;  %221 = vmatpush1.bf16.msra.mxu1 %v870_v8  ;;  %v88_v17 = vrot.slane %v1081_v14, %v1079_v13  ;;  %v96_v18 = vrot.slane %v1083_v15, %v1079_v13  ;;  %v92_v19 = vrot.slane %v1081_v14, %v91_v16  ;;  %v874_v50 = vld [vmem:[#allocation7 + $0xb8] sm:$0xff]   ;;  %v878_v54 = vld [vmem:[#allocation7 + $0xb0] sm:$0xff]   ;;  %v881_v57 = vld [vmem:[#allocation7 + $0x28] sm:$0xff]   ;;  %p1002_p6 = scmp.ne.s32.totalorder %s753_s3, %s1001_s11  ;;  %p1007_p8 = scmp.lt.s32.totalorder %s1001_s11, %s1001_s11 }
  0x3c   :  { %v100_v23 = vrot.slane %v1083_v15, %v91_v16  ;;  %805 = vmatprep.subr.bf16.mxu0 %v871_v47  ;;  %827 = vmatprep.subr.bf16.mxu1 %v872_v48  ;;  %v882_v58 = vld [vmem:[#allocation7 + $0xa8] sm:$0xff]   ;;  %v883_v59 = vld [vmem:[#allocation7 + $0x60] sm:$0xff]   ;;  %v887_v63 = vld [vmem:[#allocation7 + $0x58] sm:$0xff]  }
  0x3d   :  { %v108_v20 = vrot.slane %v88_v17, %v1079_v13  ;;  %v116_v21 = vrot.slane %v96_v18, %v1079_v13  ;;  %v112_v22 = vrot.slane %v92_v19, %v1079_v13  ;;  %v884_v60 = vld [vmem:[#allocation7 + $0xe0] sm:$0xff]   ;;  %v888_v0 = vld [vmem:[#allocation7 + $0xd8] sm:$0xff]   ;;  %v891_v3 = vld [vmem:[#allocation7 + $0x50] sm:$0xff]   ;;  %p1008_p9 = por %p1007_p8, %p1006_p7 }
  0x3e   :  { %771 = vmatmul.mubr.msk.bf16.vlgmr.msra.gmra.mxu0 %vm161_vm0, %v74_v10  ;;  %772 = vmatmul.mubr.msk.bf16.vlgmr.msra.gmra.mxu1 %vm161_vm0, %v74_v10  ;;  %v120_v31 = vrot.slane %v100_v23, %v1079_v13  ;;  %v885_v61 = vld [vmem:[#allocation7 + $0x20] sm:$0xff]   ;;  %v889_v1 = vld [vmem:[#allocation7 + $0x18] sm:$0xff]   ;;  %v892_v4 = vld [vmem:[#allocation7 + $0xd0] sm:$0xff]  }
  0x3f   :  { %806 = vmatpush3.bf16.msra.mxu0 %v873_v49  ;;  %828 = vmatpush3.bf16.msra.mxu1 %v874_v50  ;;  %v886_v62 = vld [vmem:[#allocation7 + $0xa0] sm:$0xff]   ;;  %v890_v2 = vld [vmem:[#allocation7 + $0x98] sm:$0xff]   ;;  %v893_v5 = vld [vmem:[#allocation7 + $0x10] sm:$0xff]   ;;  %p1009_p10 = pnand %p1008_p9, %p1002_p6 }
  0x40   :  { %807 = vmatprep.subr.bf16.mxu0 %v875_v51  ;;  %829 = vmatprep.subr.bf16.mxu1 %v876_v52  ;;  %v894_v6 = vld [vmem:[#allocation7 + $0x90] sm:$0xff]   ;;  %v895_v7 = vld [vmem:[#allocation7 + $0x48] sm:$0xff]   ;;  %v899_v11 = vld [vmem:[#allocation7 + $0x40] sm:$0xff]  }
  0x41   :  { %v896_v8 = vld [vmem:[#allocation7 + $0xc8] sm:$0xff]   ;;  %v900_v16 = vld [vmem:[#allocation7 + $0xc0] sm:$0xff]  }
  0x42   :  { %v897_v9 = vld [vmem:[#allocation7 + $0x8] sm:$0xff]   ;;  %v901_v17 = vld [vmem:[#allocation7] sm:$0xff]  }
  0x43   :  { %808 = vmatpush3.bf16.msra.mxu0 %v877_v53  ;;  %830 = vmatpush3.bf16.msra.mxu1 %v878_v54  ;;  %v898_v10 = vld [vmem:[#allocation7 + $0x88] sm:$0xff]   ;;  %v902_v18 = vld [vmem:[#allocation7 + $0x80] sm:$0xff]  }
  0x44   :  { %809 = vmatprep.subr.bf16.mxu0 %v879_v55  ;;  %831 = vmatprep.subr.bf16.mxu1 %v880_v56 }
  0x47   :  { %810 = vmatpush3.bf16.msra.mxu0 %v881_v57  ;;  %832 = vmatpush3.bf16.msra.mxu1 %v882_v58 }
  0x48   :  { %811 = vmatprep.subr.bf16.mxu0 %v883_v59  ;;  %833 = vmatprep.subr.bf16.mxu1 %v884_v60 }
  0x4b   :  { %812 = vmatpush3.bf16.msra.mxu0 %v885_v61  ;;  %834 = vmatpush3.bf16.msra.mxu1 %v886_v62 }
  0x4c   :  { %813 = vmatprep.subr.bf16.mxu0 %v887_v63  ;;  %835 = vmatprep.subr.bf16.mxu1 %v888_v0 }
  0x4f   :  { %814 = vmatpush3.bf16.msra.mxu0 %v889_v1  ;;  %836 = vmatpush3.bf16.msra.mxu1 %v890_v2 }
  0x50   :  { %815 = vmatprep.subr.bf16.mxu0 %v891_v3  ;;  %837 = vmatprep.subr.bf16.mxu1 %v892_v4 }
  0x53   :  { %816 = vmatpush3.bf16.msra.mxu0 %v893_v5  ;;  %838 = vmatpush3.bf16.msra.mxu1 %v894_v6 }
  0x54   :  { %817 = vmatprep.subr.bf16.mxu0 %v895_v7  ;;  %839 = vmatprep.subr.bf16.mxu1 %v896_v8 }
  0x57   :  { %818 = vmatpush3.bf16.msra.mxu0 %v897_v9  ;;  %840 = vmatpush3.bf16.msra.mxu1 %v898_v10 }
  0x58   :  { %819 = vmatprep.subr.bf16.mxu0 %v899_v11  ;;  %841 = vmatprep.subr.bf16.mxu1 %v900_v16  ;;  %v72_v11 = vld [vmem:[#allocation8 + $0x10] sm:$0x7] }
  0x5b   :  { %820 = vmatpush3.bf16.msra.mxu0 %v901_v17  ;;  %842 = vmatpush3.bf16.msra.mxu1 %v902_v18  ;;  %v439_v18 = vrot.slane %v72_v11, %v1079_v13 }
  0xfe   :  { %v199_v24 = vpop.f32.mrf.mxu0  ;;  %v240_v25 = vpop.f32.mrf.mxu1 }
  0xff   :  { %v1095_v26 = vadd.f32 %v199_v24, %v108_v20  ;;  %v1097_v27 = vadd.f32 %v240_v25, %v116_v21 }
 0x100   :  { %v201_v28 = vpop.f32.mrf.mxu0  ;;  %v242_v29 = vpop.f32.mrf.mxu1 }
 0x101   :  { %v1099_v30 = vadd.f32 %v201_v28, %v112_v22  ;;  %v252_v34 = vmul.f32 %v1095_v26, %v1095_v26  ;;  %v254_v35 = vmul.f32 %v1097_v27, %v1097_v27  ;;  %v1110_v40 = vadd.f32 %v242_v29, %v120_v31 }
 0x102   :  { %v203_v32 = vpop.f32.mrf.mxu0  ;;  %v244_v33 = vpop.f32.mrf.mxu1 }
 0x103   :  { %v253_v36 = vmul.f32 %v1099_v30, %v1099_v30  ;;  %v247_v37 = vadd.f32 %v1099_v30, %v1095_v26  ;;  %v255_v45 = vmul.f32 %v1110_v40, %v1110_v40 }
 0x104   :  { %v204_v38 = vpop.f32.mrf.mxu0  ;;  %v245_v39 = vpop.f32.mrf.mxu1 }
 0x105   :  { %v248_v41 = vadd.f32 %v247_v37, %v1097_v27  ;;  %v256_v42 = vadd.f32 %v253_v36, %v252_v34  ;;  %v1117_v36 = vsub.s32 1, %v1076_v12  ;;  %v286_v37 = vsub.s32 5, %v1076_v12 }
 0x106   :  { %v1121_v38 = vsub.s32 2, %v1076_v12  ;;  %v330_v39 = vsub.s32 6, %v1076_v12 }
 0x107   :  { %v249_v43 = vadd.f32 %v248_v41, %v1110_v40  ;;  %v257_v44 = vadd.f32 %v256_v42, %v254_v35  ;;  %v283_v41 = vrot.slane %v1081_v14, %v1117_v36  ;;  %v287_v42 = vrot.slane %v1081_v14, %v286_v37 }
 0x108   :  { %v335_v47 = vrot.slane %v1083_v15, %v1121_v38  ;;  %v339_v12 = vrot.slane %v1083_v15, %v330_v39 }
 0x109   :  { %250 = vadd.xlane.f32.xlu0 %v249_v43  ;;  %v258_v46 = vadd.f32 %v257_v44, %v255_v45  ;;  %v291_v43 = vrot.slane %v1083_v15, %v1117_v36  ;;  %v295_v44 = vrot.slane %v1083_v15, %v286_v37  ;;  %v327_v45 = vrot.slane %v1081_v14, %v1121_v38 }
 0x10a   :  { %v303_v48 = vrot.slane %v283_v41, %v1117_v36  ;;  %v307_v49 = vrot.slane %v287_v42, %v1117_v36  ;;  %v355_v56 = vrot.slane %v335_v47, %v1121_v38  ;;  %v359_v57 = vrot.slane %v339_v12, %v1121_v38 }
 0x10b   :  { %v311_v50 = vrot.slane %v291_v43, %v1117_v36  ;;  %v315_v51 = vrot.slane %v295_v44, %v1117_v36  ;;  %v347_v55 = vrot.slane %v327_v45, %v1121_v38 }
 0x10d   :  { %259 = vadd.xlane.f32.xlu0 %v258_v46  ;;  %v331_v46 = vrot.slane %v1081_v14, %v330_v39 }
 0x10f   :  { %v351_v15 = vrot.slane %v331_v46, %v1121_v38 }
 0x192   :  { %v251_v19 = vpop.xlane.xlu0 %250 }
 0x193   :  { %v261_v20 = vmul.f32 0.0025, %v251_v19 }
 0x195   :  { %v262_v21 = vmul.f32 400.0, %v261_v20  ;;  %v276_v52 = vsub.f32 %v1095_v26, %v261_v20  ;;  %v277_v53 = vsub.f32 %v1099_v30, %v261_v20  ;;  %v278_v54 = vsub.f32 %v1097_v27, %v261_v20 }
 0x196   :  { %v260_v23 = vpop.xlane.xlu0 %259  ;;  %v279_v14 = vsub.f32 %v1110_v40, %v261_v20 }
 0x197   :  { %v263_v22 = vmul.f32 %v262_v21, %v261_v20  ;;  %v316_v58 = vmul.f32 %v303_v48, %v276_v52  ;;  %v317_v59 = vmul.f32 %v307_v49, %v277_v53  ;;  %v318_v60 = vmul.f32 %v311_v50, %v278_v54 }
 0x198   :  { %v319_v61 = vmul.f32 %v315_v51, %v279_v14  ;;  %v736_v48 = vrot.slane %v72_v11, %v1117_v36  ;;  %v742_v50 = vrot.slane %v72_v11, %v1121_v38 }
 0x199   :  { %v264_v24 = vsub.f32 %v260_v23, %v263_v22 }
 0x19b   :  { %v265_v25 = vmul.f32 0.0025062656, %v264_v24 }
 0x19d   :  { %v266_v28 = vmax.f32 %v265_v25, 0.0 }
 0x19f   :  { %903 = vrsqrt.f32 %v266_v28  ;;  %vm269_vm1 = vcmp.eq.f32.partialorder %v266_v28, inf  ;;  %v272_v32 = vand.u32 2147483648, %v266_v28  ;;  %vm271_vm2 = vcmp.eq.f32.partialorder %v266_v28, 0.0 }
 0x1ac   :  { %v904_v29 = vpop.eup %903 }
 0x1ad   :  { %v268_v31 = vmul.f32 %v904_v29, %v266_v28 }
 0x1af   :  { %v270_v33 = vsel %vm269_vm1, %v266_v28, %v268_v31 }
 0x1b0   :  { %v273_v34 = vsel %vm271_vm2, %v272_v32, %v270_v33 }
 0x1b1   :  { %v274_v35 = vadd.f32 1e-06, %v273_v34 }
 0x1b3   :  { %905 = vrcp.f32 %v274_v35 }
 0x1c0   :  { %v906_v62 = vpop.eup %905 }
 0x1c1   :  { %v321_v26 = vmul.f32 %v906_v62, %v317_v59  ;;  %v323_v63 = vmul.f32 %v906_v62, %v319_v61  ;;  %v320_v30 = vmul.f32 %v906_v62, %v316_v58  ;;  %v322_v0 = vmul.f32 %v906_v62, %v318_v60 }
 0x1c3   :  { %v361_v27 = vadd.f32 %v351_v15, %v321_v26  ;;  %v363_v1 = vadd.f32 %v359_v57, %v323_v63  ;;  %v360_v40 = vadd.f32 %v347_v55, %v320_v30  ;;  %v362_v2 = vadd.f32 %v355_v56, %v322_v0 }
 0x1c5   :  { %v365_v3 = vpack.c.bf16 %v361_v27, %v361_v27  ;;  %v367_v4 = vpack.c.bf16 %v363_v1, %v363_v1  ;;  %v364_v5 = vpack.c.bf16 %v360_v40, %v360_v40  ;;  %v366_v6 = vpack.c.bf16 %v362_v2, %v362_v2 }
 0x1c7   :  { %907 = vtanh.bf16 %v365_v3 }
 0x1c8   :  { %909 = vtanh.bf16 %v367_v4 }
 0x1c9   :  { %911 = vtanh.bf16 %v364_v5 }
 0x1ca   :  { %913 = vtanh.bf16 %v366_v6 }
 0x1d5   :  { %v908_v7 = vpop.eup %907 }
 0x1d6   :  { %v910_v8 = vpop.eup %909  ;;  %664 = vmatprep.mubr.bf16.mxu0 %v908_v7 }
 0x1d7   :  { %v912_v9 = vpop.eup %911  ;;  %704 = vmatprep.mubr.bf16.mxu1 %v910_v8 }
 0x1d8   :  { %v914_v10 = vpop.eup %913  ;;  %665 = vmatmul.mubr.bf16.vlgmr.msra.gmra.mxu0 %v912_v9 }
 0x1d9   :  { %705 = vmatmul.mubr.bf16.vlgmr.msra.gmra.mxu1 %v914_v10 }
 0x298   :  { %v821_v16 = vpop.f32.mrf.mxu0 }
 0x299   :  { %v843_v17 = vpop.f32.mrf.mxu1 }
 0x29a   :  { %v822_v19 = vpop.f32.mrf.mxu0 }
 0x29b   :  { %v823_v20 = vadd.f32 %v822_v19, %v821_v16  ;;  %v844_v21 = vpop.f32.mrf.mxu1 }
 0x29c   :  { %v824_v22 = vpop.f32.mrf.mxu0  ;;  %v845_v24 = vadd.f32 %v844_v21, %v843_v17 }
 0x29d   :  { %v667_v23 = vadd.f32 %v823_v20, %v439_v18  ;;  %v846_v25 = vpop.f32.mrf.mxu1 }
 0x29e   :  { %v825_v28 = vpop.f32.mrf.mxu0 }
 0x29f   :  { %v707_v29 = vadd.f32 %v845_v24, %v667_v23  ;;  %v847_v31 = vpop.f32.mrf.mxu1 }
 0x2a1   :  { %712 = vadd.xlane.f32.xlu1 %v707_v29  ;;  %v714_v32 = vmul.f32 %v707_v29, %v707_v29 }
 0x2a5   :  { %715 = vadd.xlane.f32.xlu1 %v714_v32 }
 0x32a   :  { %v713_v33 = vpop.xlane.xlu1 %712 }
 0x32b   :  { %v717_v34 = vmul.f32 0.015625, %v713_v33 }
 0x32d   :  { %v718_v35 = vmul.f32 64.0, %v717_v34  ;;  %v732_v49 = vsub.f32 %v707_v29, %v717_v34 }
 0x32e   :  { %v716_v39 = vpop.xlane.xlu1 %715 }
 0x32f   :  { %v719_v37 = vmul.f32 %v718_v35, %v717_v34  ;;  %v737_v51 = vmul.f32 %v736_v48, %v732_v49 }
 0x331   :  { %v720_v41 = vsub.f32 %v716_v39, %v719_v37 }
 0x333   :  { %v721_v13 = vmul.f32 0.015873017, %v720_v41 }
 0x335   :  { %v722_v42 = vmax.f32 %v721_v13, 0.0 }
 0x337   :  { %915 = vrsqrt.f32 %v722_v42  ;;  %vm725_vm3 = vcmp.eq.f32.partialorder %v722_v42, inf  ;;  %v728_v45 = vand.u32 2147483648, %v722_v42  ;;  %vm727_vm4 = vcmp.eq.f32.partialorder %v722_v42, 0.0 }
 0x344   :  { %v916_v43 = vpop.eup %915 }
 0x345   :  { %v724_v44 = vmul.f32 %v916_v43, %v722_v42 }
 0x347   :  { %v726_v46 = vsel %vm725_vm3, %v722_v42, %v724_v44 }
 0x348   :  { %v729_v47 = vsel %vm727_vm4, %v728_v45, %v726_v46 }
 0x349   :  { %v730_v12 = vadd.f32 1e-06, %v729_v47 }
 0x34b   :  { %917 = vrcp.f32 %v730_v12 }
 0x358   :  { %v918_v52 = vpop.eup %917 }
 0x359   :  { %v738_v53 = vmul.f32 %v918_v52, %v737_v51 }
 0x35b   :  { %v743_v54 = vadd.f32 %v742_v50, %v738_v53 }
 0x35d   :  { %919 = vtanh.f32 %v743_v54 }
 0x36a   :  { %v920_v14 = vpop.eup %919 }
 0x36b   :  { %745 = vst [vmem:[#allocation10] sm:$0xff] %v920_v14 }
 0x36c   :  { %1012 = shalt.err (!%p1009_p10)
}
 0x36d   :  { %755 = dma.vmem_to_hbm [thread:$0]  %s753_s3, 128, %s1158_s4, [#allocation4]  }
 0x36e   :  { %1027 = dma.done.wait [#allocation4], 128  }
 0x36f   :  { %1028 = vsyncadd [#allocation4], 4294967168 }
 0x370   :  { %759 = vsyncpa [#allocation3], 1 }
 0x371   :  { %760 = vsyncpa [#allocation6], 1 }
 0x372   :  { %761 = vsyncpa [#allocation9], 1 }
 0x373   :  { %762 = vsyncpa [#allocation4], 1 }

</bundles_post_ra>
